<compile_context>
chip_gen: v6e
topology: v6e:2x2x1
jax: 0.10.0
libtpu: 0.0.40
codegen_flags: <defaults>
</compile_context>

<pallas_src>
import functools

import jax
import jax.numpy as jnp
from jax import lax
from jax.experimental import pallas as pl
from jax.experimental.pallas import tpu as pltpu


def _avg_pool2d_kernel(pwt_ref, phg_ref, mean_ref, var_ref,
                       out_mean_ref, out_var_ref, *, var_scale):
    """One channel-group tile: out = kron(I_G, PH) @ x @ PW^T for mean & var."""
    pwt = pwt_ref[...]        # (W, Wout)        column-pooling weights (1/k)
    phg = phg_ref[...]        # (G*Hout, G*H)    block-diag row-pooling weights (1/k)

    def pool(x):              # x: (G*H, W)
        t = jnp.dot(x, pwt, preferred_element_type=jnp.float32)      # (G*H, Wout)
        return jnp.dot(phg, t, preferred_element_type=jnp.float32)   # (G*Hout, Wout)

    out_mean_ref[...] = pool(mean_ref[...]).astype(out_mean_ref.dtype)
    out_var_ref[...] = (pool(var_ref[...]) * var_scale).astype(out_var_ref.dtype)


def _pool_matrix(n_in, n_out, kernel_size, pad, dtype):
    """M[o, i] = 1/k if input index i falls in output o's (stride-2) window."""
    o = jnp.arange(n_out)[:, None]
    i = jnp.arange(n_in)[None, :]
    start = 2 * o - pad
    hit = (i >= start) & (i < start + kernel_size)
    return hit.astype(dtype) / float(kernel_size)           # (n_out, n_in)


def _pick_block_channels(R, H, W, Hout, Wout, itemsize,
                         vmem_budget=24 << 20, max_g=64):
    """Largest channel-group G that (a) divides R, (b) keeps G*Hout 8-aligned,
    and (c) keeps the double-buffered pipelined footprint under the budget."""
    def footprint(g):
        io = 2 * g * H * W + 2 * g * Hout * Wout             # mean/var in + out blocks
        mats = W * Wout + (g * Hout) * (g * H)                # PW^T + kron(I_g, PH)
        return 2 * (io + mats) * itemsize                     # x2 double buffering
    candidates = [g for g in range(8, min(R, max_g) + 1, 8)
                  if R % g == 0 and footprint(g) <= vmem_budget]
    if candidates:
        return max(candidates)
    # Block spanning all channels is always a legal BlockSpec (block == full dim).
    # TODO(synk): pad N*C up to a multiple of 8 for huge, awkwardly-factored
    # channel counts instead of falling back to a single row block.
    return R


def avg_pool2d_adf(inputs_mean, inputs_variance, *, kernel_size=2,
                   keep_variance_fn=None, block_channels=None):
    """ADF AvgPool2d forward (NCHW, stride=2, padding=1, count_include_pad)."""
    if kernel_size < 2:
        raise ValueError("kernel_size must be >= 2 for padding=1")
    N, C, H, W = inputs_mean.shape
    pad, stride = 1, 2
    Hout = (H + 2 * pad - kernel_size) // stride + 1
    Wout = (W + 2 * pad - kernel_size) // stride + 1
    R = N * C
    dtype = inputs_mean.dtype
    itemsize = jnp.dtype(dtype).itemsize

    G = block_channels or _pick_block_channels(R, H, W, Hout, Wout, itemsize)
    if R % G != 0:
        raise ValueError(f"block_channels={G} must divide N*C={R}")
    if G % 8 != 0 and G != R:
        raise ValueError(f"block_channels={G} must be a multiple of 8 (or == N*C)")

    # Free layout reshapes: rows are (n, c, h) with h minor; lanes are W.
    mean2 = inputs_mean.reshape(R * H, W)
    var2 = inputs_variance.reshape(R * H, W)

    # Pooling matrices (tiny, built on host side; padding is implicit zeros).
    ph = _pool_matrix(H, Hout, kernel_size, pad, dtype)            # (Hout, H)
    pw_t = _pool_matrix(W, Wout, kernel_size, pad, dtype).T        # (W, Wout)
    phg = jnp.kron(jnp.eye(G, dtype=dtype), ph)                    # (G*Hout, G*H)

    grid = (R // G,)
    kernel = functools.partial(_avg_pool2d_kernel, var_scale=float(1.0 / (H * W)))

    flops_per_tensor = 2 * (R * H) * W * Wout + 2 * (R * Hout) * (G * H) * Wout
    bytes_accessed = itemsize * (2 * R * H * W + 2 * R * Hout * Wout
                                 + W * Wout + (G * Hout) * (G * H))

    out_mean2, out_var2 = pl.pallas_call(
        kernel,
        out_shape=(
            jax.ShapeDtypeStruct((R * Hout, Wout), dtype),
            jax.ShapeDtypeStruct((R * Hout, Wout), dtype),
        ),
        grid_spec=pltpu.PrefetchScalarGridSpec(
            num_scalar_prefetch=0,
            grid=grid,
            in_specs=[
                pl.BlockSpec((W, Wout), lambda i: (0, 0)),          # PW^T (resident)
                pl.BlockSpec((G * Hout, G * H), lambda i: (0, 0)),  # kron(I_G, PH)
                pl.BlockSpec((G * H, W), lambda i: (i, 0)),         # mean tile
                pl.BlockSpec((G * H, W), lambda i: (i, 0)),         # var tile
            ],
            out_specs=[
                pl.BlockSpec((G * Hout, Wout), lambda i: (i, 0)),
                pl.BlockSpec((G * Hout, Wout), lambda i: (i, 0)),
            ],
        ),
        compiler_params=pltpu.CompilerParams(
            dimension_semantics=("parallel",),
            vmem_limit_bytes=32 * 1024 * 1024,
        ),
        cost_estimate=pl.CostEstimate(
            flops=2 * flops_per_tensor, transcendentals=0,
            bytes_accessed=bytes_accessed),
    )(pw_t, phg, mean2, var2)

    out_mean = out_mean2.reshape(N, C, Hout, Wout)
    out_var = out_var2.reshape(N, C, Hout, Wout)      # already divided by H*W once
    if keep_variance_fn is not None:
        out_var = keep_variance_fn(out_var)
    out_var = out_var / (H * W)                        # second division (as in torch)
    return out_mean, out_var


if __name__ == "__main__":
    key = jax.random.PRNGKey(0)
    k_mean, k_var = jax.random.split(key)

    N, C, H, W = 2, 16, 16, 16
    inputs_mean = jax.random.normal(k_mean, (N, C, H, W), dtype=jnp.float32)
    inputs_variance = jax.random.uniform(k_var, (N, C, H, W), dtype=jnp.float32)

    # block_channels=8 -> grid=(4,) so the pipelined multi-step path is exercised
    # even at this tiny demo size (the auto-picker would choose one big block here).
    out_mean, out_var = avg_pool2d_adf(inputs_mean, inputs_variance,
                                       kernel_size=2, block_channels=8)
    jax.block_until_ready((out_mean, out_var))

    # Pure-JAX reference: avg_pool2d(k=2, stride=2, padding=1, count_include_pad).
    def ref_avg_pool(x, k):
        s = lax.reduce_window(x, 0.0, lax.add, (1, 1, k, k), (1, 1, 2, 2),
                              [(0, 0), (0, 0), (1, 1), (1, 1)])
        return s / float(k * k)

    ref_mean = ref_avg_pool(inputs_mean, 2)
    ref_var = ref_avg_pool(inputs_variance, 2) / (H * W) / (H * W)

    assert out_mean.shape == (N, C, H // 2 + 1, W // 2 + 1)
    assert jnp.allclose(out_mean, ref_mean, rtol=1e-5, atol=1e-5)
    assert jnp.allclose(out_var, ref_var, rtol=1e-5, atol=1e-8)

    print("KERNEL_OK")
</pallas_src>

<mosaic_0001>
module attributes {stable_mosaic.version = 11 : i64} {
  func.func @_avg_pool2d_kernel(%arg0: i32, %arg1: memref<16x9xf32, #tpu.memory_space<vmem>>, %arg2: memref<72x128xf32, #tpu.memory_space<vmem>>, %arg3: memref<128x16xf32, #tpu.memory_space<vmem>>, %arg4: memref<128x16xf32, #tpu.memory_space<vmem>>, %arg5: memref<72x9xf32, #tpu.memory_space<vmem>>, %arg6: memref<72x9xf32, #tpu.memory_space<vmem>>) attributes {dimension_semantics = [#tpu.dimension_semantics<parallel>], iteration_bounds = array<i64: 4>, scalar_prefetch = 0 : i64, scratch_operands = 0 : i64, tpu.core_type = #tpu.core_type<tc>, window_params = [{pipeline_mode = #tpu.pipeline_mode<synchronous>, transform_indices = @transform_0, window_bounds = array<i64: 16, 9>}, {pipeline_mode = #tpu.pipeline_mode<synchronous>, transform_indices = @transform_1, window_bounds = array<i64: 72, 128>}, {transform_indices = @transform_2, window_bounds = array<i64: 128, 16>}, {transform_indices = @transform_3, window_bounds = array<i64: 128, 16>}, {transform_indices = @transform_4, window_bounds = array<i64: 72, 9>}, {transform_indices = @transform_5, window_bounds = array<i64: 72, 9>}]} {
    %c0 = arith.constant 0 : index
    %c0_0 = arith.constant 0 : index
    %0 = vector.load %arg1[%c0, %c0_0] : memref<16x9xf32, #tpu.memory_space<vmem>>, vector<16x9xf32>
    %c0_1 = arith.constant 0 : index
    %c0_2 = arith.constant 0 : index
    %1 = vector.load %arg2[%c0_1, %c0_2] : memref<72x128xf32, #tpu.memory_space<vmem>>, vector<72x128xf32>
    %c0_3 = arith.constant 0 : index
    %c0_4 = arith.constant 0 : index
    %2 = vector.load %arg3[%c0_3, %c0_4] : memref<128x16xf32, #tpu.memory_space<vmem>>, vector<128x16xf32>
    %cst = arith.constant dense<0.000000e+00> : vector<128x9xf32>
    %3 = tpu.matmul %2, %0, %cst {dimension_numbers = #tpu.dot_dimension_numbers<[1], [0], [0], [1], [0, 0, 1, 1], [], []>} : vector<128x16xf32>, vector<16x9xf32>, vector<128x9xf32> -> vector<128x9xf32>
    %cst_5 = arith.constant dense<0.000000e+00> : vector<72x9xf32>
    %4 = tpu.matmul %1, %3, %cst_5 {dimension_numbers = #tpu.dot_dimension_numbers<[1], [0], [0], [1], [0, 0, 1, 1], [], []>} : vector<72x128xf32>, vector<128x9xf32>, vector<72x9xf32> -> vector<72x9xf32>
    %c0_6 = arith.constant 0 : index
    %c0_7 = arith.constant 0 : index
    %5 = vector.load %arg5[%c0_6, %c0_7] : memref<72x9xf32, #tpu.memory_space<vmem>>, vector<72x9xf32>
    tpu.vector_store %arg5[%c0_6, %c0_7], %4 {strides = array<i32>} : memref<72x9xf32, #tpu.memory_space<vmem>>, vector<72x9xf32>,
    %c0_8 = arith.constant 0 : index
    %c0_9 = arith.constant 0 : index
    %6 = vector.load %arg4[%c0_8, %c0_9] : memref<128x16xf32, #tpu.memory_space<vmem>>, vector<128x16xf32>
    %cst_10 = arith.constant dense<0.000000e+00> : vector<128x9xf32>
    %7 = tpu.matmul %6, %0, %cst_10 {dimension_numbers = #tpu.dot_dimension_numbers<[1], [0], [0], [1], [0, 0, 1, 1], [], []>} : vector<128x16xf32>, vector<16x9xf32>, vector<128x9xf32> -> vector<128x9xf32>
    %cst_11 = arith.constant dense<0.000000e+00> : vector<72x9xf32>
    %8 = tpu.matmul %1, %7, %cst_11 {dimension_numbers = #tpu.dot_dimension_numbers<[1], [0], [0], [1], [0, 0, 1, 1], [], []>} : vector<72x128xf32>, vector<128x9xf32>, vector<72x9xf32> -> vector<72x9xf32>
    %cst_12 = arith.constant 3.906250e-03 : f32
    %9 = vector.broadcast %cst_12 : f32 to vector<72x9xf32>
    %10 = arith.mulf %8, %9 : vector<72x9xf32>
    %c0_13 = arith.constant 0 : index
    %c0_14 = arith.constant 0 : index
    %11 = vector.load %arg6[%c0_13, %c0_14] : memref<72x9xf32, #tpu.memory_space<vmem>>, vector<72x9xf32>
    tpu.vector_store %arg6[%c0_13, %c0_14], %10 {strides = array<i32>} : memref<72x9xf32, #tpu.memory_space<vmem>>, vector<72x9xf32>,
    return
  }
  func.func @transform_0(%arg0: i32) -> (i32, i32) {
    %c0_i32 = arith.constant 0 : i32
    %c0_i32_0 = arith.constant 0 : i32
    %c0_i32_1 = arith.constant 0 : i32
    return %c0_i32, %c0_i32_0 : i32, i32
  }
  func.func @transform_1(%arg0: i32) -> (i32, i32) {
    %c0_i32 = arith.constant 0 : i32
    %c0_i32_0 = arith.constant 0 : i32
    %c0_i32_1 = arith.constant 0 : i32
    return %c0_i32, %c0_i32_0 : i32, i32
  }
  func.func @transform_2(%arg0: i32) -> (i32, i32) {
    %c0_i32 = arith.constant 0 : i32
    %c0_i32_0 = arith.constant 0 : i32
    return %arg0, %c0_i32 : i32, i32
  }
  func.func @transform_3(%arg0: i32) -> (i32, i32) {
    %c0_i32 = arith.constant 0 : i32
    %c0_i32_0 = arith.constant 0 : i32
    return %arg0, %c0_i32 : i32, i32
  }
  func.func @transform_4(%arg0: i32) -> (i32, i32) {
    %c0_i32 = arith.constant 0 : i32
    %c0_i32_0 = arith.constant 0 : i32
    return %arg0, %c0_i32 : i32, i32
  }
  func.func @transform_5(%arg0: i32) -> (i32, i32) {
    %c0_i32 = arith.constant 0 : i32
    %c0_i32_0 = arith.constant 0 : i32
    return %arg0, %c0_i32 : i32, i32
  }
}

</mosaic_0001>

<bundles_post_ra>
// kernel: tpu_custom_call.1
= control target key start
LH: loop header
LB: loop body
LE: loop exit
PB: predicated region body
PF: predicated region fallthrough
CT: control target
= control target key end

     0   :  { %s1399_s18 = smov 0   ;;  %s1671_s0 = inlined_call_operand.vmem [shape: f32[16,9], index: 0, kind: input, shape index: {}]   ;;  %s1672_s1 = inlined_call_operand.vmem [shape: f32[72,128], index: 1, kind: input, shape index: {}]   ;;  %s1673_s2 = inlined_call_operand.vmem [shape: f32[512,16], index: 2, kind: input, shape index: {}]   ;;  %s1674_s3 = inlined_call_operand.vmem [shape: f32[512,16], index: 3, kind: input, shape index: {}]   ;;  %s1675_s4 = inlined_call_operand.vmem [shape: f32[288,9], index: 4, kind: output, shape index: {0}]   ;;  %s1676_s5 = inlined_call_operand.vmem [shape: f32[288,9], index: 5, kind: output, shape index: {1}]  }
   0x1 LB: > { %s1044_s19 = sadd.s32 4294967295, %s1365_s18   ;;  %p1048_p0 = scmp.ge.s32.totalorder %s1365_s18, 1  ;;  %s1365_s18 = sphi %s1399_s18, %s16_s18  }
   0x2   : > { %p202_p1 = scmp.lt.s32.totalorder %s1365_s18, 5 }
   0x4   : > { %p203_p2 = pnand %p1048_p0, %p202_p1 }
   0x5   : > { %s1049_s24 = sshll.u32 (!%p203_p2), %s1044_s19, 4  ;;  %s252_s27 = smul.u32 (!%p203_p2), 9, %s1044_s19 }
   0x6   : > { %206 = sbr.rel (%p203_p2) target bundleno = 497 (0x1f1), region = 36  ;;  %p241_p3 = scmp.lt.s32.totalorder (!%p203_p2), %s1049_s24, 63 }
   0x7   : > { %p253_p4 = scmp.lt.s32.totalorder (!%p203_p2), %s252_s27, 35 }
   0xb   : > { %v265_v0 = vld [vmem:[%s1671_s0 + $0x8] sm:$0xff]  ;;  %v264_v1 = vld [vmem:[%s1671_s0] sm:$0xff]  ;;  %s1678_s24 = smov (!%p241_p3, %s1049_s24), 63  ;;  %vm291_vm0 = vcmask 130048   ;;  %v1367_v34 = vmov 0.0   ;;  %vm1368_vm1 = vmmov 0  }
   0xc   : > { %1175 = vmatprep.subr.mxu1 %v265_v0  ;;  %1262 = vmatprep.subr.mxu0 %v265_v0  ;;  %s1050_s25 = sshll.u32 %s1678_s24, 3  ;;  %s1680_s27 = smov (!%p253_p4, %s252_s27), 35  ;;  %vm595_vm2 = vcmask 72704  }
   0xd   : > { %1176 = vmatpush3.msra.mxu1 %v265_v0  ;;  %1263 = vmatpush3.msra.mxu0 %v265_v0  ;;  %s1418_s28 = scalar_lea.vmem %s1673_s2, %s1050_s25  ;;  %s1423_s6 = scalar_lea.vmem %s1674_s3, %s1050_s25 }
   0xe   : > { %1177 = vmatprep.subr.mxu1 %v264_v1  ;;  %1264 = vmatprep.subr.mxu0 %v264_v1  ;;  %v275_v2 = vld [vmem:[%s1418_s28] sm:$0xff]  ;;  %v276_v4 = vld [vmem:[%s1418_s28 + $0x8] sm:$0xff]  ;;  %v277_v6 = vld [vmem:[%s1418_s28 + $0x10] sm:$0xff] }
   0xf   : > { %1178 = vmatpush3.msra.mxu1 %v264_v1  ;;  %1265 = vmatpush3.msra.mxu0 %v264_v1  ;;  %v605_v3 = vld [vmem:[%s1423_s6] sm:$0xff]  ;;  %v606_v5 = vld [vmem:[%s1423_s6 + $0x8] sm:$0xff]  ;;  %v607_v7 = vld [vmem:[%s1423_s6 + $0x10] sm:$0xff] }
  0x10   : > { %1179 = vmatprep.mubr.msk.f32.mxu1 %vm291_vm0, %v275_v2  ;;  %1266 = vmatprep.mubr.msk.f32.mxu0 %vm291_vm0, %v605_v3  ;;  %v278_v8 = vld [vmem:[%s1418_s28 + $0x18] sm:$0xff]  ;;  %v279_v10 = vld [vmem:[%s1418_s28 + $0x20] sm:$0xff]  ;;  %v280_v12 = vld [vmem:[%s1418_s28 + $0x28] sm:$0xff] }
  0x11   : > { %1180 = vmatmul.mubr.msk.f32.vlgmr.msra.gmra.mxu1 %vm291_vm0, %v276_v4  ;;  %1267 = vmatmul.mubr.msk.f32.vlgmr.msra.gmra.mxu0 %vm291_vm0, %v606_v5  ;;  %v608_v9 = vld [vmem:[%s1423_s6 + $0x18] sm:$0xff]  ;;  %v609_v11 = vld [vmem:[%s1423_s6 + $0x20] sm:$0xff]  ;;  %v610_v13 = vld [vmem:[%s1423_s6 + $0x28] sm:$0xff] }
  0x12   : > { %1182 = vmatprep.mubr.msk.f32.mxu1 %vm291_vm0, %v277_v6  ;;  %1269 = vmatprep.mubr.msk.f32.mxu0 %vm291_vm0, %v607_v7  ;;  %v281_v14 = vld [vmem:[%s1418_s28 + $0x30] sm:$0xff]  ;;  %v282_v16 = vld [vmem:[%s1418_s28 + $0x38] sm:$0xff]  ;;  %v283_v18 = vld [vmem:[%s1418_s28 + $0x40] sm:$0xff] }
  0x13   : > { %v611_v15 = vld [vmem:[%s1423_s6 + $0x30] sm:$0xff]  ;;  %v612_v17 = vld [vmem:[%s1423_s6 + $0x38] sm:$0xff]  ;;  %v613_v19 = vld [vmem:[%s1423_s6 + $0x40] sm:$0xff]  ;;  %1203 = vmatprep.subr.mxu1 %v1367_v34  ;;  %1290 = vmatprep.subr.mxu0 %v1367_v34 }
  0x14   : > { %v284_v20 = vld [vmem:[%s1418_s28 + $0x48] sm:$0xff]  ;;  %v285_v22 = vld [vmem:[%s1418_s28 + $0x50] sm:$0xff]  ;;  %v286_v24 = vld [vmem:[%s1418_s28 + $0x58] sm:$0xff] }
  0x15   : > { %1183 = vmatmul.mubr.msk.f32.gmra.mxu1 %vm291_vm0, %v278_v8  ;;  %1270 = vmatmul.mubr.msk.f32.gmra.mxu0 %vm291_vm0, %v608_v9  ;;  %v614_v21 = vld [vmem:[%s1423_s6 + $0x48] sm:$0xff]  ;;  %v615_v23 = vld [vmem:[%s1423_s6 + $0x50] sm:$0xff]  ;;  %v616_v25 = vld [vmem:[%s1423_s6 + $0x58] sm:$0xff] }
  0x16   : > { %1185 = vmatprep.mubr.msk.f32.mxu1 %vm291_vm0, %v279_v10  ;;  %1272 = vmatprep.mubr.msk.f32.mxu0 %vm291_vm0, %v609_v11  ;;  %v287_v26 = vld [vmem:[%s1418_s28 + $0x60] sm:$0xff]  ;;  %v288_v28 = vld [vmem:[%s1418_s28 + $0x68] sm:$0xff]  ;;  %v289_v30 = vld [vmem:[%s1418_s28 + $0x70] sm:$0xff] }
  0x17   : > { %v617_v27 = vld [vmem:[%s1423_s6 + $0x60] sm:$0xff]  ;;  %v618_v29 = vld [vmem:[%s1423_s6 + $0x68] sm:$0xff]  ;;  %v619_v31 = vld [vmem:[%s1423_s6 + $0x70] sm:$0xff] }
  0x18   : > { %v290_v32 = vld [vmem:[%s1418_s28 + $0x78] sm:$0xff]  ;;  %v266_v3 = vld [vmem:[%s1672_s1] sm:$0xff]  ;;  %v267_v4 = vld [vmem:[%s1672_s1 + $0x8] sm:$0xff]  ;;  %s1053_s28 = sshll.u32 %s1680_s27, 3 }
  0x19   : > { %1186 = vmatmul.mubr.msk.f32.gmra.mxu1 %vm291_vm0, %v280_v12  ;;  %1273 = vmatmul.mubr.msk.f32.gmra.mxu0 %vm291_vm0, %v610_v13  ;;  %v620_v33 = vld [vmem:[%s1423_s6 + $0x78] sm:$0xff]  ;;  %v268_v5 = vld [vmem:[%s1672_s1 + $0x10] sm:$0xff]  ;;  %v270_v7 = vld [vmem:[%s1672_s1 + $0x20] sm:$0xff]  ;;  %s1625_s6 = scalar_lea.vmem %s1675_s4, %s1053_s28  ;;  %s1630_s9 = scalar_lea.vmem %s1676_s5, %s1053_s28 }
  0x1a   : > { %1188 = vmatprep.mubr.msk.f32.mxu1 %vm291_vm0, %v281_v14  ;;  %1275 = vmatprep.mubr.msk.f32.mxu0 %vm291_vm0, %v611_v15  ;;  %v269_v6 = vld [vmem:[%s1672_s1 + $0x18] sm:$0xff]  ;;  %v271_v8 = vld [vmem:[%s1672_s1 + $0x28] sm:$0xff]  ;;  %v272_v9 = vld [vmem:[%s1672_s1 + $0x30] sm:$0xff] }
  0x1b   : > { %v273_v10 = vld [vmem:[%s1672_s1 + $0x38] sm:$0xff]  ;;  %v274_v11 = vld [vmem:[%s1672_s1 + $0x40] sm:$0xff] }
  0x1d   : > { %1189 = vmatmul.mubr.msk.f32.gmra.mxu1 %vm291_vm0, %v282_v16  ;;  %1276 = vmatmul.mubr.msk.f32.gmra.mxu0 %vm291_vm0, %v612_v17 }
  0x1e   : > { %1191 = vmatprep.mubr.msk.f32.mxu1 %vm291_vm0, %v283_v18  ;;  %1278 = vmatprep.mubr.msk.f32.mxu0 %vm291_vm0, %v613_v19 }
  0x21   : > { %1192 = vmatmul.mubr.msk.f32.gmra.mxu1 %vm291_vm0, %v284_v20  ;;  %1279 = vmatmul.mubr.msk.f32.gmra.mxu0 %vm291_vm0, %v614_v21 }
  0x22   : > { %1194 = vmatprep.mubr.msk.f32.mxu1 %vm291_vm0, %v285_v22  ;;  %1281 = vmatprep.mubr.msk.f32.mxu0 %vm291_vm0, %v615_v23 }
  0x25   : > { %1195 = vmatmul.mubr.msk.f32.gmra.mxu1 %vm291_vm0, %v286_v24  ;;  %1282 = vmatmul.mubr.msk.f32.gmra.mxu0 %vm291_vm0, %v616_v25 }
  0x26   : > { %1197 = vmatprep.mubr.msk.f32.mxu1 %vm291_vm0, %v287_v26  ;;  %1284 = vmatprep.mubr.msk.f32.mxu0 %vm291_vm0, %v617_v27 }
  0x29   : > { %1198 = vmatmul.mubr.msk.f32.gmra.mxu1 %vm291_vm0, %v288_v28  ;;  %1285 = vmatmul.mubr.msk.f32.gmra.mxu0 %vm291_vm0, %v618_v29 }
  0x2a   : > { %1200 = vmatprep.mubr.msk.f32.mxu1 %vm291_vm0, %v289_v30  ;;  %1287 = vmatprep.mubr.msk.f32.mxu0 %vm291_vm0, %v619_v31 }
  0x2d   : > { %1201 = vmatmul.mubr.msk.f32.gmra.mxu1 %vm291_vm0, %v290_v32  ;;  %1288 = vmatmul.mubr.msk.f32.gmra.mxu0 %vm291_vm0, %v620_v33 }
  0x2e   : > { %1235 = vmatprep.mubr.msk.f32.mxu1 %vm1368_vm1, %v1367_v34  ;;  %1322 = vmatprep.mubr.msk.f32.mxu0 %vm1368_vm1, %v1367_v34 }
  0xd1   : > { %v1495_v35 = vpop.f32.mrf.mxu1  ;;  %v1497_v36 = vpop.f32.mrf.mxu0 }
  0xd3   : > { %v1499_v37 = vpop.f32.mrf.mxu1  ;;  %v1501_v38 = vpop.f32.mrf.mxu0 }
  0xd5   : > { %v1503_v39 = vpop.f32.mrf.mxu1  ;;  %v1505_v40 = vpop.f32.mrf.mxu0 }
  0xd7   : > { %v1507_v41 = vpop.f32.mrf.mxu1  ;;  %v1509_v42 = vpop.f32.mrf.mxu0 }
  0xd9   : > { %v1511_v43 = vpop.f32.mrf.mxu1  ;;  %v1513_v44 = vpop.f32.mrf.mxu0 }
  0xdb   : > { %v1515_v45 = vpop.f32.mrf.mxu1  ;;  %v1517_v46 = vpop.f32.mrf.mxu0 }
  0xdd   : > { %v1190_v47 = vpop.f32.mrf.mxu1  ;;  %v1277_v48 = vpop.f32.mrf.mxu0 }
  0xdf   : > { %v436_v49 = vpop.f32.mrf.mxu1  ;;  %v765_v50 = vpop.f32.mrf.mxu0 }
  0xe1   : > { %v1193_v51 = vpop.f32.mrf.mxu1  ;;  %v1280_v52 = vpop.f32.mrf.mxu0 }
  0xe3   : > { %v446_v53 = vpop.f32.mrf.mxu1  ;;  %v775_v54 = vpop.f32.mrf.mxu0 }
  0xe5   : > { %v1196_v55 = vpop.f32.mrf.mxu1  ;;  %v1283_v56 = vpop.f32.mrf.mxu0 }
  0xe7   : > { %v456_v57 = vpop.f32.mrf.mxu1  ;;  %v785_v58 = vpop.f32.mrf.mxu0 }
  0xe9   : > { %v1199_v59 = vpop.f32.mrf.mxu1  ;;  %v1286_v60 = vpop.f32.mrf.mxu0 }
  0xeb   : > { %v466_v61 = vpop.f32.mrf.mxu1  ;;  %v795_v62 = vpop.f32.mrf.mxu0 }
  0xed   : > { %v1202_v63 = vpop.f32.mrf.mxu1  ;;  %v1289_v0 = vpop.f32.mrf.mxu0 }
  0xee   : > { %1204 = vmatpush3.msra.mxu1 %v1202_v63  ;;  %1291 = vmatpush3.msra.mxu0 %v1289_v0 }
  0xef   : > { %v476_v1 = vpop.f32.mrf.mxu1  ;;  %1205 = vmatprep.subr.mxu1 %v1367_v34  ;;  %v805_v2 = vpop.f32.mrf.mxu0  ;;  %1292 = vmatprep.subr.mxu0 %v1367_v34 }
  0xf0   : > { %1206 = vmatpush3.msra.mxu1 %v476_v1  ;;  %1293 = vmatpush3.msra.mxu0 %v805_v2 }
  0xf1   : > { %1207 = vmatprep.subr.mxu1 %v1367_v34  ;;  %1294 = vmatprep.subr.mxu0 %v1367_v34 }
  0xf2   : > { %1208 = vmatpush3.msra.mxu1 %v1199_v59  ;;  %1295 = vmatpush3.msra.mxu0 %v1286_v60 }
  0xf3   : > { %1209 = vmatprep.subr.mxu1 %v1367_v34  ;;  %1296 = vmatprep.subr.mxu0 %v1367_v34 }
  0xf4   : > { %1210 = vmatpush3.msra.mxu1 %v466_v61  ;;  %1297 = vmatpush3.msra.mxu0 %v795_v62 }
  0xf5   : > { %1211 = vmatprep.subr.mxu1 %v1367_v34  ;;  %1298 = vmatprep.subr.mxu0 %v1367_v34 }
  0xf6   : > { %1212 = vmatpush3.msra.mxu1 %v1196_v55  ;;  %1299 = vmatpush3.msra.mxu0 %v1283_v56 }
  0xf7   : > { %1213 = vmatprep.subr.mxu1 %v1367_v34  ;;  %1300 = vmatprep.subr.mxu0 %v1367_v34 }
  0xf8   : > { %1214 = vmatpush3.msra.mxu1 %v456_v57  ;;  %1301 = vmatpush3.msra.mxu0 %v785_v58 }
  0xf9   : > { %1215 = vmatprep.subr.mxu1 %v1367_v34  ;;  %1302 = vmatprep.subr.mxu0 %v1367_v34 }
  0xfa   : > { %1216 = vmatpush3.msra.mxu1 %v1193_v51  ;;  %1303 = vmatpush3.msra.mxu0 %v1280_v52 }
  0xfb   : > { %1217 = vmatprep.subr.mxu1 %v1367_v34  ;;  %1304 = vmatprep.subr.mxu0 %v1367_v34 }
  0xfc   : > { %1218 = vmatpush3.msra.mxu1 %v446_v53  ;;  %1305 = vmatpush3.msra.mxu0 %v775_v54 }
  0xfd   : > { %1219 = vmatprep.subr.mxu1 %v1367_v34  ;;  %1306 = vmatprep.subr.mxu0 %v1367_v34 }
  0xfe   : > { %1220 = vmatpush3.msra.mxu1 %v1190_v47  ;;  %1307 = vmatpush3.msra.mxu0 %v1277_v48 }
  0xff   : > { %1221 = vmatprep.subr.mxu1 %v1367_v34  ;;  %1308 = vmatprep.subr.mxu0 %v1367_v34 }
 0x100   : > { %1222 = vmatpush3.msra.mxu1 %v436_v49  ;;  %1309 = vmatpush3.msra.mxu0 %v765_v50 }
 0x101   : > { %1223 = vmatprep.subr.mxu1 %v1367_v34  ;;  %1310 = vmatprep.subr.mxu0 %v1367_v34 }
 0x102   : > { %1224 = vmatpush3.msra.mxu1 %v1511_v43  ;;  %1311 = vmatpush3.msra.mxu0 %v1513_v44 }
 0x103   : > { %1225 = vmatprep.subr.mxu1 %v1367_v34  ;;  %1312 = vmatprep.subr.mxu0 %v1367_v34 }
 0x104   : > { %1226 = vmatpush3.msra.mxu1 %v1515_v45  ;;  %1313 = vmatpush3.msra.mxu0 %v1517_v46 }
 0x105   : > { %1227 = vmatprep.subr.mxu1 %v1367_v34  ;;  %1314 = vmatprep.subr.mxu0 %v1367_v34 }
 0x106   : > { %1228 = vmatpush3.msra.mxu1 %v1503_v39  ;;  %1315 = vmatpush3.msra.mxu0 %v1505_v40 }
 0x107   : > { %1229 = vmatprep.subr.mxu1 %v1367_v34  ;;  %1316 = vmatprep.subr.mxu0 %v1367_v34 }
 0x108   : > { %1230 = vmatpush3.msra.mxu1 %v1507_v41  ;;  %1317 = vmatpush3.msra.mxu0 %v1509_v42 }
 0x109   : > { %1231 = vmatprep.subr.mxu1 %v1367_v34  ;;  %1318 = vmatprep.subr.mxu0 %v1367_v34 }
 0x10a   : > { %1232 = vmatpush3.msra.mxu1 %v1495_v35  ;;  %1319 = vmatpush3.msra.mxu0 %v1497_v36 }
 0x10b   : > { %1233 = vmatprep.subr.mxu1 %v1367_v34  ;;  %1320 = vmatprep.subr.mxu0 %v1367_v34 }
 0x10c   : > { %1234 = vmatpush3.msra.mxu1 %v1499_v37  ;;  %1321 = vmatpush3.msra.mxu0 %v1501_v38 }
 0x10d   : > { %1236 = vmatmul.mubr.f32.vlgmr.msra.gmra.mxu1 %v266_v3  ;;  %1323 = vmatmul.mubr.f32.vlgmr.msra.gmra.mxu0 %v266_v3 }
 0x10e   : > { %1238 = vmatprep.mubr.msk.f32.mxu1 %vm1368_vm1, %v1367_v34  ;;  %1325 = vmatprep.mubr.msk.f32.mxu0 %vm1368_vm1, %v1367_v34 }
 0x111   : > { %1239 = vmatmul.mubr.f32.gmra.mxu1 %v267_v4  ;;  %1326 = vmatmul.mubr.f32.gmra.mxu0 %v267_v4 }
 0x112   : > { %1241 = vmatprep.mubr.msk.f32.mxu1 %vm1368_vm1, %v1367_v34  ;;  %1328 = vmatprep.mubr.msk.f32.mxu0 %vm1368_vm1, %v1367_v34 }
 0x115   : > { %1242 = vmatmul.mubr.f32.gmra.mxu1 %v268_v5  ;;  %1329 = vmatmul.mubr.f32.gmra.mxu0 %v268_v5 }
 0x116   : > { %1244 = vmatprep.mubr.msk.f32.mxu1 %vm1368_vm1, %v1367_v34  ;;  %1331 = vmatprep.mubr.msk.f32.mxu0 %vm1368_vm1, %v1367_v34 }
 0x119   : > { %1245 = vmatmul.mubr.f32.gmra.mxu1 %v269_v6  ;;  %1332 = vmatmul.mubr.f32.gmra.mxu0 %v269_v6 }
 0x11a   : > { %1247 = vmatprep.mubr.msk.f32.mxu1 %vm1368_vm1, %v1367_v34  ;;  %1334 = vmatprep.mubr.msk.f32.mxu0 %vm1368_vm1, %v1367_v34 }
 0x11d   : > { %1248 = vmatmul.mubr.f32.gmra.mxu1 %v270_v7  ;;  %1335 = vmatmul.mubr.f32.gmra.mxu0 %v270_v7 }
 0x11e   : > { %1250 = vmatprep.mubr.msk.f32.mxu1 %vm1368_vm1, %v1367_v34  ;;  %1337 = vmatprep.mubr.msk.f32.mxu0 %vm1368_vm1, %v1367_v34 }
 0x121   : > { %1251 = vmatmul.mubr.f32.gmra.mxu1 %v271_v8  ;;  %1338 = vmatmul.mubr.f32.gmra.mxu0 %v271_v8 }
 0x122   : > { %1253 = vmatprep.mubr.msk.f32.mxu1 %vm1368_vm1, %v1367_v34  ;;  %1340 = vmatprep.mubr.msk.f32.mxu0 %vm1368_vm1, %v1367_v34 }
 0x125   : > { %1254 = vmatmul.mubr.f32.gmra.mxu1 %v272_v9  ;;  %1341 = vmatmul.mubr.f32.gmra.mxu0 %v272_v9 }
 0x126   : > { %1256 = vmatprep.mubr.msk.f32.mxu1 %vm1368_vm1, %v1367_v34  ;;  %1343 = vmatprep.mubr.msk.f32.mxu0 %vm1368_vm1, %v1367_v34 }
 0x129   : > { %1257 = vmatmul.mubr.f32.gmra.mxu1 %v273_v10  ;;  %1344 = vmatmul.mubr.f32.gmra.mxu0 %v273_v10 }
 0x12a   : > { %1259 = vmatprep.mubr.msk.f32.mxu1 %vm1368_vm1, %v1367_v34  ;;  %1346 = vmatprep.mubr.msk.f32.mxu0 %vm1368_vm1, %v1367_v34 }
 0x12d   : > { %1260 = vmatmul.mubr.f32.gmra.mxu1 %v274_v11  ;;  %1347 = vmatmul.mubr.f32.gmra.mxu0 %v274_v11 }
 0x1cd   : > { %v551_v12 = vpop.f32.mrf.mxu1  ;;  %v880_v13 = vpop.f32.mrf.mxu0 }
 0x1ce   : > { %596 = vst.msk [vmem:[%s1625_s6] sm:$0xff] %vm595_vm2, %v551_v12  ;;  %v924_v14 = vmul.f32 0.00390625, %v880_v13 }
 0x1cf   : > { %v1237_v15 = vpop.f32.mrf.mxu1  ;;  %v1324_v16 = vpop.f32.mrf.mxu0 }
 0x1d0   : > { %933 = vst.msk [vmem:[%s1630_s9] sm:$0xff] %vm595_vm2, %v924_v14 }
 0x1d1   : > { %v556_v17 = vpop.f32.mrf.mxu1  ;;  %v885_v18 = vpop.f32.mrf.mxu0 }
 0x1d2   : > { %597 = vst.msk [vmem:[%s1625_s6 + $0x8] sm:$0xff] %vm595_vm2, %v556_v17  ;;  %v925_v19 = vmul.f32 0.00390625, %v885_v18 }
 0x1d3   : > { %v1240_v20 = vpop.f32.mrf.mxu1  ;;  %v1327_v21 = vpop.f32.mrf.mxu0 }
 0x1d4   : > { %934 = vst.msk [vmem:[%s1630_s9 + $0x8] sm:$0xff] %vm595_vm2, %v925_v19 }
 0x1d5   : > { %v561_v22 = vpop.f32.mrf.mxu1  ;;  %v890_v23 = vpop.f32.mrf.mxu0 }
 0x1d6   : > { %598 = vst.msk [vmem:[%s1625_s6 + $0x10] sm:$0xff] %vm595_vm2, %v561_v22  ;;  %v926_v24 = vmul.f32 0.00390625, %v890_v23 }
 0x1d7   : > { %v1243_v25 = vpop.f32.mrf.mxu1  ;;  %v1330_v26 = vpop.f32.mrf.mxu0 }
 0x1d8   : > { %935 = vst.msk [vmem:[%s1630_s9 + $0x10] sm:$0xff] %vm595_vm2, %v926_v24 }
 0x1d9   : > { %v566_v27 = vpop.f32.mrf.mxu1  ;;  %v895_v28 = vpop.f32.mrf.mxu0 }
 0x1da   : > { %599 = vst.msk [vmem:[%s1625_s6 + $0x18] sm:$0xff] %vm595_vm2, %v566_v27  ;;  %v927_v29 = vmul.f32 0.00390625, %v895_v28 }
 0x1db   : > { %v1246_v30 = vpop.f32.mrf.mxu1  ;;  %v1333_v31 = vpop.f32.mrf.mxu0 }
 0x1dc   : > { %936 = vst.msk [vmem:[%s1630_s9 + $0x18] sm:$0xff] %vm595_vm2, %v927_v29 }
 0x1dd   : > { %v571_v32 = vpop.f32.mrf.mxu1  ;;  %v900_v33 = vpop.f32.mrf.mxu0 }
 0x1de   : > { %600 = vst.msk [vmem:[%s1625_s6 + $0x20] sm:$0xff] %vm595_vm2, %v571_v32  ;;  %v928_v34 = vmul.f32 0.00390625, %v900_v33 }
 0x1df   : > { %v1249_v35 = vpop.f32.mrf.mxu1  ;;  %v1336_v36 = vpop.f32.mrf.mxu0 }
 0x1e0   : > { %937 = vst.msk [vmem:[%s1630_s9 + $0x20] sm:$0xff] %vm595_vm2, %v928_v34 }
 0x1e1   : > { %v576_v37 = vpop.f32.mrf.mxu1  ;;  %v905_v38 = vpop.f32.mrf.mxu0 }
 0x1e2   : > { %601 = vst.msk [vmem:[%s1625_s6 + $0x28] sm:$0xff] %vm595_vm2, %v576_v37  ;;  %v929_v39 = vmul.f32 0.00390625, %v905_v38 }
 0x1e3   : > { %v1252_v40 = vpop.f32.mrf.mxu1  ;;  %v1339_v41 = vpop.f32.mrf.mxu0 }
 0x1e4   : > { %938 = vst.msk [vmem:[%s1630_s9 + $0x28] sm:$0xff] %vm595_vm2, %v929_v39 }
 0x1e5   : > { %v581_v42 = vpop.f32.mrf.mxu1  ;;  %v910_v43 = vpop.f32.mrf.mxu0 }
 0x1e6   : > { %602 = vst.msk [vmem:[%s1625_s6 + $0x30] sm:$0xff] %vm595_vm2, %v581_v42  ;;  %v930_v44 = vmul.f32 0.00390625, %v910_v43 }
 0x1e7   : > { %v1255_v45 = vpop.f32.mrf.mxu1  ;;  %v1342_v46 = vpop.f32.mrf.mxu0 }
 0x1e8   : > { %939 = vst.msk [vmem:[%s1630_s9 + $0x30] sm:$0xff] %vm595_vm2, %v930_v44 }
 0x1e9   : > { %v586_v47 = vpop.f32.mrf.mxu1  ;;  %v915_v48 = vpop.f32.mrf.mxu0 }
 0x1ea   : > { %603 = vst.msk [vmem:[%s1625_s6 + $0x38] sm:$0xff] %vm595_vm2, %v586_v47  ;;  %v931_v49 = vmul.f32 0.00390625, %v915_v48 }
 0x1eb   : > { %v1258_v50 = vpop.f32.mrf.mxu1  ;;  %v1345_v51 = vpop.f32.mrf.mxu0 }
 0x1ec   : > { %940 = vst.msk [vmem:[%s1630_s9 + $0x38] sm:$0xff] %vm595_vm2, %v931_v49 }
 0x1ed   : > { %v591_v52 = vpop.f32.mrf.mxu1  ;;  %v920_v53 = vpop.f32.mrf.mxu0 }
 0x1ee   : > { %604 = vst.msk [vmem:[%s1625_s6 + $0x40] sm:$0xff] %vm595_vm2, %v591_v52  ;;  %v932_v54 = vmul.f32 0.00390625, %v920_v53 }
 0x1ef   : > { %v1261_v55 = vpop.f32.mrf.mxu1  ;;  %v1348_v56 = vpop.f32.mrf.mxu0 }
 0x1f0   : > { %941 = vst.msk [vmem:[%s1630_s9 + $0x40] sm:$0xff] %vm595_vm2, %v932_v54 }
 0x1f1 PF: > { %s16_s18 = sadd.s32 1, %s1365_s18  }
 0x1f2   : > { %p13_p5 = scmp.ge.s32.totalorder %s16_s18, 6  }
 0x1f4   :  { %15 = sbr.rel (!%p13_p5) target bundleno = 1 (0x1), region = 81 }

</bundles_post_ra>
